<compile_context>
chip_gen: v7x
topology: tpu7x:2x2x1
jax: 0.10.0
libtpu: 0.0.40
codegen_flags: <defaults>
</compile_context>

<pallas_src>
import functools

import jax
import jax.numpy as jnp
from jax.experimental import pallas as pl
from jax.experimental.pallas import tpu as pltpu

HIDDEN = 50        # matches the PyTorch module
HIDDEN_PAD = 64    # padded hidden width (zero-filled)
OUT_PAD = 128      # padded last-layer width; real value lives in column 0
LANES = 128        # batch rows packed per output lane-row


def _round_up(x, m):
    return (x + m - 1) // m * m


def _choose_block_b(B, block_b):
    """Batch tile size: multiple of 128; >=2 tiles for medium/large batches."""
    block_b = max(LANES, _round_up(block_b, LANES))
    if B <= 2 * LANES:
        return _round_up(max(B, 1), LANES)          # tiny batch: single tile
    # Split into >= 2 grid steps so v7x's two TensorCores both get work.
    half = _round_up(-(-B // 2), LANES)
    return min(block_b, half)


def _value_net_kernel(x_ref, w1_ref, b1_ref, w2_ref, b2_ref,
                      w3_ref, b3_ref, w4_ref, b4_ref, o_ref):
    """Fused 4-layer MLP forward for one batch tile, entirely in VMEM.

    x_ref : (bb, state_dim)  f32        (cast to the MXU dtype in-kernel)
    w*_ref: padded weights [in, out]    compute dtype (bf16 or f32)
    b*_ref: padded biases  (1, out)     f32
    o_ref : (bb//128, 128)   f32        lane-packed values:
            o_ref[g, j] == value of batch row g*128 + j of this tile
    """
    cdt = w1_ref.dtype  # MXU input dtype; accumulation is always f32.

    x = x_ref[...].astype(cdt)           # in-kernel cast, hidden under the DMA
    h = jnp.tanh(jnp.dot(x, w1_ref[...],
                         preferred_element_type=jnp.float32) + b1_ref[...])
    h = jnp.tanh(jnp.dot(h.astype(cdt), w2_ref[...],
                         preferred_element_type=jnp.float32) + b2_ref[...])
    h = jnp.tanh(jnp.dot(h.astype(cdt), w3_ref[...],
                         preferred_element_type=jnp.float32) + b3_ref[...])
    out = jnp.dot(h.astype(cdt), w4_ref[...],
                  preferred_element_type=jnp.float32) + b4_ref[...]

    # out: (bb, OUT_PAD) f32, only column 0 is real.  Pack 128 batch rows per
    # lane row so HBM writeback is lane-dense (4 B/row of real data instead of
    # a 512 B padded row):
    #   out3[g, j, :] = out[g*128 + j, :]        (leading-dim split, free)
    #   packed[g, j]  = out[g*128 + j, 0]        (minor-dim transpose + slice)
    bb = out.shape[0]
    out3 = out.reshape(bb // LANES, LANES, OUT_PAD)
    packed = jnp.transpose(out3, (0, 2, 1))[:, 0, :]
    o_ref[...] = packed


@functools.partial(jax.jit,
                   static_argnames=("block_b", "compute_dtype",
                                    "vmem_limit_bytes"))
def value_network_forward(states, params, *, block_b=4096,
                          compute_dtype=jnp.bfloat16,
                          vmem_limit_bytes=None):
    """Pallas forward pass of ValueNetwork.

    states: [B, state_dim] float32 (any B).
    params: dict w1,b1,w2,b2,w3,b3,w4,b4 (weights [in,out], biases [1,out],
            unpadded — i.e. hidden width 50, output width 1).
    returns: [B, 1] float32
    """
    B, S = states.shape

    bb = _choose_block_b(B, block_b)
    grid = pl.cdiv(B, bb)                  # ragged last tile is fine (see top)
    G = bb // LANES                        # packed output rows per tile

    # Weight padding is tiny (<=64x128) — negligible wrapper cost.
    def pad(a, rows, cols):
        out = jnp.zeros((rows, cols), jnp.float32)
        return out.at[:a.shape[0], :a.shape[1]].set(a.astype(jnp.float32))

    w1 = pad(params["w1"], S, HIDDEN_PAD).astype(compute_dtype)
    w2 = pad(params["w2"], HIDDEN_PAD, HIDDEN_PAD).astype(compute_dtype)
    w3 = pad(params["w3"], HIDDEN_PAD, HIDDEN_PAD).astype(compute_dtype)
    w4 = pad(params["w4"], HIDDEN_PAD, OUT_PAD).astype(compute_dtype)
    b1 = pad(params["b1"], 1, HIDDEN_PAD)   # biases stay f32
    b2 = pad(params["b2"], 1, HIDDEN_PAD)
    b3 = pad(params["b3"], 1, HIDDEN_PAD)
    b4 = pad(params["b4"], 1, OUT_PAD)

    # Constant block index -> fetched once, VMEM-resident across the grid.
    full = lambda shape: pl.BlockSpec(shape, lambda i: (0, 0))

    out = pl.pallas_call(
        _value_net_kernel,
        out_shape=jax.ShapeDtypeStruct((grid, G, LANES), jnp.float32),
        grid_spec=pltpu.PrefetchScalarGridSpec(
            num_scalar_prefetch=0,
            grid=(grid,),
            in_specs=[
                pl.BlockSpec((bb, S), lambda i: (i, 0)),   # f32 batch tile
                full(w1.shape), full(b1.shape),
                full(w2.shape), full(b2.shape),
                full(w3.shape), full(b3.shape),
                full(w4.shape), full(b4.shape),
            ],
            # Lane-packed output; leading (grid) dim squeezed out of the ref.
            out_specs=pl.BlockSpec((None, G, LANES), lambda i: (i, 0, 0)),
        ),
        compiler_params=pltpu.CompilerParams(
            dimension_semantics=("parallel",),
            vmem_limit_bytes=vmem_limit_bytes),
    )(states, w1, b1, w2, b2, w3, b3, w4, b4)

    # (grid, G, 128) lane-packed -> (B, 1); row-major flatten restores order:
    # flat index (i*G + g)*128 + j == global batch row i*bb + g*128 + j.
    return out.reshape(-1, 1)[:B]


def init_params(key, state_dim):
    """Deterministic init matching torch.nn.Linear's U(-1/sqrt(fan_in), +)."""
    def linear(key, fan_in, fan_out):
        kw, kb = jax.random.split(key)
        bound = 1.0 / jnp.sqrt(fan_in)
        w = jax.random.uniform(kw, (fan_in, fan_out), jnp.float32, -bound, bound)
        b = jax.random.uniform(kb, (1, fan_out), jnp.float32, -bound, bound)
        return w, b

    k1, k2, k3, k4 = jax.random.split(key, 4)
    w1, b1 = linear(k1, state_dim, HIDDEN)
    w2, b2 = linear(k2, HIDDEN, HIDDEN)
    w3, b3 = linear(k3, HIDDEN, HIDDEN)
    w4, b4 = linear(k4, HIDDEN, 1)
    return dict(w1=w1, b1=b1, w2=w2, b2=b2, w3=w3, b3=b3, w4=w4, b4=b4)


def reference_forward(states, p, compute_dtype=jnp.float32):
    """Pure-JAX reference; compute_dtype mirrors the kernel's MXU input dtype."""
    c = lambda a: a.astype(compute_dtype)
    h = jnp.tanh(jnp.dot(c(states), c(p["w1"]),
                         preferred_element_type=jnp.float32) + p["b1"])
    h = jnp.tanh(jnp.dot(c(h), c(p["w2"]),
                         preferred_element_type=jnp.float32) + p["b2"])
    h = jnp.tanh(jnp.dot(c(h), c(p["w3"]),
                         preferred_element_type=jnp.float32) + p["b3"])
    return jnp.dot(c(h), c(p["w4"]),
                   preferred_element_type=jnp.float32) + p["b4"]


if __name__ == "__main__":
    key = jax.random.PRNGKey(0)
    k_param, k_state, k_big = jax.random.split(key, 3)

    state_dim = 32
    batch = 16  # small-shape correctness test (single ragged block)

    params = init_params(k_param, state_dim)
    states = jax.random.normal(k_state, (batch, state_dim), jnp.float32)

    # Default bf16-MXU path and a pure-f32 path for a tight numerical check.
    vals_bf16 = jax.block_until_ready(value_network_forward(states, params))
    vals_f32 = jax.block_until_ready(
        value_network_forward(states, params, compute_dtype=jnp.float32))

    ref_f32 = reference_forward(states, params, jnp.float32)
    ref_bf16 = reference_forward(states, params, jnp.bfloat16)

    assert vals_f32.shape == (batch, 1) and vals_bf16.shape == (batch, 1)
    assert jnp.allclose(vals_f32, ref_f32, atol=1e-5, rtol=1e-5)
    assert jnp.allclose(vals_bf16, ref_bf16, atol=5e-3, rtol=5e-3)
    assert jnp.allclose(vals_bf16, ref_f32, atol=5e-2, rtol=5e-2)

    # Multi-tile path: grid >= 2 (v7x megacore split) with a ragged last tile.
    big_b = 2048 + 64
    big_states = jax.random.normal(k_big, (big_b, state_dim), jnp.float32)
    big_vals = jax.block_until_ready(value_network_forward(big_states, params))
    assert big_vals.shape == (big_b, 1)
    assert jnp.allclose(big_vals,
                        reference_forward(big_states, params, jnp.bfloat16),
                        atol=5e-3, rtol=5e-3)

    print("KERNEL_OK")
</pallas_src>

<mosaic_0001>
module attributes {stable_mosaic.version = 11 : i64} {
  func.func @_value_net_kernel(%arg0: i32, %arg1: memref<128x32xf32, #tpu.memory_space<vmem>>, %arg2: memref<32x64xbf16, #tpu.memory_space<vmem>>, %arg3: memref<1x64xf32, #tpu.memory_space<vmem>>, %arg4: memref<64x64xbf16, #tpu.memory_space<vmem>>, %arg5: memref<1x64xf32, #tpu.memory_space<vmem>>, %arg6: memref<64x64xbf16, #tpu.memory_space<vmem>>, %arg7: memref<1x64xf32, #tpu.memory_space<vmem>>, %arg8: memref<64x128xbf16, #tpu.memory_space<vmem>>, %arg9: memref<1x128xf32, #tpu.memory_space<vmem>>, %arg10: memref<1x1x128xf32, #tpu.memory_space<vmem>>) attributes {dimension_semantics = [#tpu.dimension_semantics<parallel>], iteration_bounds = array<i64: 1>, scalar_prefetch = 0 : i64, scratch_operands = 0 : i64, tpu.core_type = #tpu.core_type<tc>, window_params = [{transform_indices = @transform_0, window_bounds = array<i64: 128, 32>}, {pipeline_mode = #tpu.pipeline_mode<synchronous>, transform_indices = @transform_1, window_bounds = array<i64: 32, 64>}, {pipeline_mode = #tpu.pipeline_mode<synchronous>, transform_indices = @transform_2, window_bounds = array<i64: 1, 64>}, {pipeline_mode = #tpu.pipeline_mode<synchronous>, transform_indices = @transform_3, window_bounds = array<i64: 64, 64>}, {pipeline_mode = #tpu.pipeline_mode<synchronous>, transform_indices = @transform_4, window_bounds = array<i64: 1, 64>}, {pipeline_mode = #tpu.pipeline_mode<synchronous>, transform_indices = @transform_5, window_bounds = array<i64: 64, 64>}, {pipeline_mode = #tpu.pipeline_mode<synchronous>, transform_indices = @transform_6, window_bounds = array<i64: 1, 64>}, {pipeline_mode = #tpu.pipeline_mode<synchronous>, transform_indices = @transform_7, window_bounds = array<i64: 64, 128>}, {pipeline_mode = #tpu.pipeline_mode<synchronous>, transform_indices = @transform_8, window_bounds = array<i64: 1, 128>}, {transform_indices = @transform_9, window_bounds = array<i64: 1, 1, 128>}]} {
    %c0 = arith.constant 0 : index
    %c0_0 = arith.constant 0 : index
    %0 = vector.load %arg1[%c0, %c0_0] : memref<128x32xf32, #tpu.memory_space<vmem>>, vector<128x32xf32>
    %1 = arith.truncf %0 : vector<128x32xf32> to vector<128x32xbf16>
    %c0_1 = arith.constant 0 : index
    %c0_2 = arith.constant 0 : index
    %2 = vector.load %arg2[%c0_1, %c0_2] : memref<32x64xbf16, #tpu.memory_space<vmem>>, vector<32x64xbf16>
    %cst = arith.constant dense<0.000000e+00> : vector<128x64xf32>
    %3 = tpu.matmul %1, %2, %cst {dimension_numbers = #tpu.dot_dimension_numbers<[1], [0], [0], [1], [0, 0, 1, 1], [], []>} : vector<128x32xbf16>, vector<32x64xbf16>, vector<128x64xf32> -> vector<128x64xf32>
    %c0_3 = arith.constant 0 : index
    %c0_4 = arith.constant 0 : index
    %4 = vector.load %arg3[%c0_3, %c0_4] : memref<1x64xf32, #tpu.memory_space<vmem>>, vector<1x64xf32>
    %5 = vector.broadcast %4 : vector<1x64xf32> to vector<128x64xf32>
    %6 = arith.addf %3, %5 : vector<128x64xf32>
    %7 = math.tanh %6 : vector<128x64xf32>
    %8 = arith.truncf %7 : vector<128x64xf32> to vector<128x64xbf16>
    %c0_5 = arith.constant 0 : index
    %c0_6 = arith.constant 0 : index
    %9 = vector.load %arg4[%c0_5, %c0_6] : memref<64x64xbf16, #tpu.memory_space<vmem>>, vector<64x64xbf16>
    %cst_7 = arith.constant dense<0.000000e+00> : vector<128x64xf32>
    %10 = tpu.matmul %8, %9, %cst_7 {dimension_numbers = #tpu.dot_dimension_numbers<[1], [0], [0], [1], [0, 0, 1, 1], [], []>} : vector<128x64xbf16>, vector<64x64xbf16>, vector<128x64xf32> -> vector<128x64xf32>
    %c0_8 = arith.constant 0 : index
    %c0_9 = arith.constant 0 : index
    %11 = vector.load %arg5[%c0_8, %c0_9] : memref<1x64xf32, #tpu.memory_space<vmem>>, vector<1x64xf32>
    %12 = vector.broadcast %11 : vector<1x64xf32> to vector<128x64xf32>
    %13 = arith.addf %10, %12 : vector<128x64xf32>
    %14 = math.tanh %13 : vector<128x64xf32>
    %15 = arith.truncf %14 : vector<128x64xf32> to vector<128x64xbf16>
    %c0_10 = arith.constant 0 : index
    %c0_11 = arith.constant 0 : index
    %16 = vector.load %arg6[%c0_10, %c0_11] : memref<64x64xbf16, #tpu.memory_space<vmem>>, vector<64x64xbf16>
    %cst_12 = arith.constant dense<0.000000e+00> : vector<128x64xf32>
    %17 = tpu.matmul %15, %16, %cst_12 {dimension_numbers = #tpu.dot_dimension_numbers<[1], [0], [0], [1], [0, 0, 1, 1], [], []>} : vector<128x64xbf16>, vector<64x64xbf16>, vector<128x64xf32> -> vector<128x64xf32>
    %c0_13 = arith.constant 0 : index
    %c0_14 = arith.constant 0 : index
    %18 = vector.load %arg7[%c0_13, %c0_14] : memref<1x64xf32, #tpu.memory_space<vmem>>, vector<1x64xf32>
    %19 = vector.broadcast %18 : vector<1x64xf32> to vector<128x64xf32>
    %20 = arith.addf %17, %19 : vector<128x64xf32>
    %21 = math.tanh %20 : vector<128x64xf32>
    %22 = arith.truncf %21 : vector<128x64xf32> to vector<128x64xbf16>
    %c0_15 = arith.constant 0 : index
    %c0_16 = arith.constant 0 : index
    %23 = vector.load %arg8[%c0_15, %c0_16] : memref<64x128xbf16, #tpu.memory_space<vmem>>, vector<64x128xbf16>
    %cst_17 = arith.constant dense<0.000000e+00> : vector<128x128xf32>
    %24 = tpu.matmul %22, %23, %cst_17 {dimension_numbers = #tpu.dot_dimension_numbers<[1], [0], [0], [1], [0, 0, 1, 1], [], []>} : vector<128x64xbf16>, vector<64x128xbf16>, vector<128x128xf32> -> vector<128x128xf32>
    %c0_18 = arith.constant 0 : index
    %c0_19 = arith.constant 0 : index
    %25 = vector.load %arg9[%c0_18, %c0_19] : memref<1x128xf32, #tpu.memory_space<vmem>>, vector<1x128xf32>
    %26 = vector.broadcast %25 : vector<1x128xf32> to vector<128x128xf32>
    %27 = arith.addf %24, %26 : vector<128x128xf32>
    %28 = vector.shape_cast %27 : vector<128x128xf32> to vector<1x128x128xf32>
    %29 = tpu.transpose %28, [0, 2, 1] : vector<1x128x128xf32> -> vector<1x128x128xf32>
    %30 = vector.extract_strided_slice %29 {offsets = [0, 0, 0], sizes = [1, 1, 128], strides = [1, 1, 1]} : vector<1x128x128xf32> to vector<1x1x128xf32>
    %31 = vector.shape_cast %30 : vector<1x1x128xf32> to vector<1x128xf32>
    %c0_20 = arith.constant 0 : index
    %c0_21 = arith.constant 0 : index
    %c0_22 = arith.constant 0 : index
    %32 = vector.load %arg10[%c0_20, %c0_21, %c0_22] : memref<1x1x128xf32, #tpu.memory_space<vmem>>, vector<1x1x128xf32>
    %33 = vector.shape_cast %32 : vector<1x1x128xf32> to vector<1x128xf32>
    %34 = vector.shape_cast %31 : vector<1x128xf32> to vector<1x1x128xf32>
    tpu.vector_store %arg10[%c0_20, %c0_21, %c0_22], %34 {strides = array<i32>} : memref<1x1x128xf32, #tpu.memory_space<vmem>>, vector<1x1x128xf32>,
    return
  }
  func.func @transform_0(%arg0: i32) -> (i32, i32) {
    %c0_i32 = arith.constant 0 : i32
    %c0_i32_0 = arith.constant 0 : i32
    return %arg0, %c0_i32 : i32, i32
  }
  func.func @transform_1(%arg0: i32) -> (i32, i32) {
    %c0_i32 = arith.constant 0 : i32
    %c0_i32_0 = arith.constant 0 : i32
    %c0_i32_1 = arith.constant 0 : i32
    return %c0_i32, %c0_i32_0 : i32, i32
  }
  func.func @transform_2(%arg0: i32) -> (i32, i32) {
    %c0_i32 = arith.constant 0 : i32
    %c0_i32_0 = arith.constant 0 : i32
    %c0_i32_1 = arith.constant 0 : i32
    return %c0_i32, %c0_i32_0 : i32, i32
  }
  func.func @transform_3(%arg0: i32) -> (i32, i32) {
    %c0_i32 = arith.constant 0 : i32
    %c0_i32_0 = arith.constant 0 : i32
    %c0_i32_1 = arith.constant 0 : i32
    return %c0_i32, %c0_i32_0 : i32, i32
  }
  func.func @transform_4(%arg0: i32) -> (i32, i32) {
    %c0_i32 = arith.constant 0 : i32
    %c0_i32_0 = arith.constant 0 : i32
    %c0_i32_1 = arith.constant 0 : i32
    return %c0_i32, %c0_i32_0 : i32, i32
  }
  func.func @transform_5(%arg0: i32) -> (i32, i32) {
    %c0_i32 = arith.constant 0 : i32
    %c0_i32_0 = arith.constant 0 : i32
    %c0_i32_1 = arith.constant 0 : i32
    return %c0_i32, %c0_i32_0 : i32, i32
  }
  func.func @transform_6(%arg0: i32) -> (i32, i32) {
    %c0_i32 = arith.constant 0 : i32
    %c0_i32_0 = arith.constant 0 : i32
    %c0_i32_1 = arith.constant 0 : i32
    return %c0_i32, %c0_i32_0 : i32, i32
  }
  func.func @transform_7(%arg0: i32) -> (i32, i32) {
    %c0_i32 = arith.constant 0 : i32
    %c0_i32_0 = arith.constant 0 : i32
    %c0_i32_1 = arith.constant 0 : i32
    return %c0_i32, %c0_i32_0 : i32, i32
  }
  func.func @transform_8(%arg0: i32) -> (i32, i32) {
    %c0_i32 = arith.constant 0 : i32
    %c0_i32_0 = arith.constant 0 : i32
    %c0_i32_1 = arith.constant 0 : i32
    return %c0_i32, %c0_i32_0 : i32, i32
  }
  func.func @transform_9(%arg0: i32) -> (i32, i32, i32) {
    %c0_i32 = arith.constant 0 : i32
    %c0_i32_0 = arith.constant 0 : i32
    %c0_i32_1 = arith.constant 0 : i32
    return %arg0, %c0_i32, %c0_i32_0 : i32, i32, i32
  }
}

</mosaic_0001>

<bundles_post_ra>
// kernel: value_network_forward.1
= control target key start
LH: loop header
LB: loop body
LE: loop exit
PB: predicated region body
PF: predicated region fallthrough
CT: control target
= control target key end

     0   :  { %vm80_vm0 = vcmask 261120   ;;  %vm265_vm1 = vcmask 523264   ;;  %s1295_s1 = inlined_call_operand.vmem [shape: bf16[32,64], index: 1, kind: input, shape index: {}]   ;;  %s1296_s0 = inlined_call_operand.vmem [shape: f32[16,32], index: 0, kind: input, shape index: {}]   ;;  %s1297_s3 = inlined_call_operand.vmem [shape: bf16[64,64], index: 3, kind: input, shape index: {}]   ;;  %s1298_s5 = inlined_call_operand.vmem [shape: bf16[64,64], index: 5, kind: input, shape index: {}]   ;;  %s1299_s2 = inlined_call_operand.vmem [shape: f32[1,64], index: 2, kind: input, shape index: {}]   ;;  %s1300_s7 = inlined_call_operand.vmem [shape: bf16[64,128], index: 7, kind: input, shape index: {}]   ;;  %s1301_s4 = inlined_call_operand.vmem [shape: f32[1,64], index: 4, kind: input, shape index: {}]   ;;  %s1302_s6 = inlined_call_operand.vmem [shape: f32[1,64], index: 6, kind: input, shape index: {}]   ;;  %s1303_s8 = inlined_call_operand.vmem [shape: f32[1,128], index: 8, kind: input, shape index: {}]   ;;  %s1304_s9 = inlined_call_operand.vmem [shape: f32[1,1,128], index: 9, kind: output, shape index: {}]  }
   0x1   :  { %v980_v0 = vld [vmem:[%s1295_s1] sm:$0xff]   ;;  %v981_v1 = vld [vmem:[%s1295_s1 + $0x8] sm:$0xff]   ;;  %v35_v5 = vld [vmem:[%s1296_s0 + $0x10] sm:$0xff] }
   0x2   :  { %888 = vmatprep.subr.bf16.mxu0 %v980_v0  ;;  %v33_v2 = vld [vmem:[%s1296_s0] sm:$0xff]  ;;  %v34_v3 = vld [vmem:[%s1296_s0 + $0x8] sm:$0xff]  ;;  %v36_v6 = vld [vmem:[%s1296_s0 + $0x18] sm:$0xff] }
   0x3   :  { %889 = vmatpush3.bf16.msra.mxu0 %v980_v0  ;;  %v49_v4 = vpack.c.bf16 %v34_v3, %v33_v2  ;;  %v37_v7 = vld [vmem:[%s1296_s0 + $0x20] sm:$0xff]  ;;  %v38_v8 = vld [vmem:[%s1296_s0 + $0x28] sm:$0xff]  ;;  %v50_v9 = vpack.c.bf16 %v36_v6, %v35_v5  ;;  %v39_v11 = vld [vmem:[%s1296_s0 + $0x30] sm:$0xff] }
   0x4   :  { %890 = vmatprep.subr.bf16.mxu0 %v981_v1  ;;  %v51_v10 = vpack.c.bf16 %v38_v8, %v37_v7  ;;  %v40_v12 = vld [vmem:[%s1296_s0 + $0x38] sm:$0xff]  ;;  %v41_v13 = vld [vmem:[%s1296_s0 + $0x40] sm:$0xff]  ;;  %v42_v14 = vld [vmem:[%s1296_s0 + $0x48] sm:$0xff] }
   0x5   :  { %892 = vmatprep.mubr.msk.bf16.mxu0 %vm80_vm0, %v49_v4  ;;  %v52_v15 = vpack.c.bf16 %v40_v12, %v39_v11  ;;  %v53_v16 = vpack.c.bf16 %v42_v14, %v41_v13  ;;  %v43_v17 = vld [vmem:[%s1296_s0 + $0x50] sm:$0xff]  ;;  %v44_v18 = vld [vmem:[%s1296_s0 + $0x58] sm:$0xff]  ;;  %v45_v19 = vld [vmem:[%s1296_s0 + $0x60] sm:$0xff] }
   0x6   :  { %v46_v20 = vld [vmem:[%s1296_s0 + $0x68] sm:$0xff]  ;;  %v54_v21 = vpack.c.bf16 %v44_v18, %v43_v17  ;;  %v47_v23 = vld [vmem:[%s1296_s0 + $0x70] sm:$0xff]  ;;  %v48_v24 = vld [vmem:[%s1296_s0 + $0x78] sm:$0xff] }
   0x7   :  { %891 = vmatpush3.bf16.msra.mxu0 %v981_v1  ;;  %v55_v22 = vpack.c.bf16 %v46_v20, %v45_v19  ;;  %v56_v25 = vpack.c.bf16 %v48_v24, %v47_v23  ;;  %v982_v26 = vld [vmem:[%s1297_s3] sm:$0xff]   ;;  %v983_v27 = vld [vmem:[%s1297_s3 + $0x8] sm:$0xff]   ;;  %v984_v28 = vld [vmem:[%s1297_s3 + $0x10] sm:$0xff]  }
   0x8   :  { %908 = vmatprep.subr.bf16.mxu1 %v982_v26  ;;  %v985_v29 = vld [vmem:[%s1297_s3 + $0x18] sm:$0xff]   ;;  %v986_v30 = vld [vmem:[%s1298_s5] sm:$0xff]   ;;  %v987_v31 = vld [vmem:[%s1298_s5 + $0x8] sm:$0xff]  }
   0x9   :  { %909 = vmatpush3.bf16.msra.mxu1 %v982_v26  ;;  %932 = vmatprep.subr.bf16.mxu0 %v986_v30  ;;  %v1223_v32 = vld [vmem:[%s1299_s2] ss:$0 sm:$0xff]  ;;  %v989_v26 = vld [vmem:[%s1298_s5 + $0x18] sm:$0xff]  }
   0xa   :  { %893 = vmatmul.mubr.msk.bf16.vlgmr.msra.gmra.mrb[0].mxu0 %vm80_vm0, %v50_v9  ;;  %910 = vmatprep.subr.bf16.mxu1 %v983_v27 }
   0xb   :  { %896 = vmatprep.mubr.msk.bf16.mxu0 %vm80_vm0, %v51_v10  ;;  %933 = vmatpush3.bf16.msra.mxu0 %v986_v30 }
   0xc   :  { %934 = vmatprep.subr.bf16.mxu0 %v987_v31 }
   0xd   :  { %911 = vmatpush3.bf16.msra.mxu1 %v983_v27  ;;  %v990_v27 = vld [vmem:[%s1300_s7] sm:$0xff]  }
   0xe   :  { %912 = vmatprep.subr.bf16.mxu1 %v984_v28 }
   0xf   :  { %935 = vmatpush3.bf16.msra.mxu0 %v987_v31 }
  0x11   :  { %913 = vmatpush3.bf16.msra.mxu1 %v984_v28  ;;  %v991_v28 = vld [vmem:[%s1300_s7 + $0x8] sm:$0xff]  }
  0x12   :  { %897 = vmatmul.mubr.msk.bf16.gmra.mrb[4].mxu0 %vm80_vm0, %v52_v15  ;;  %914 = vmatprep.subr.bf16.mxu1 %v985_v29 }
  0x13   :  { %900 = vmatprep.mubr.msk.bf16.mxu0 %vm80_vm0, %v53_v16 }
  0x15   :  { %915 = vmatpush3.bf16.msra.mxu1 %v985_v29  ;;  %v803_v29 = vld [vmem:[%s1301_s4] ss:$0 sm:$0xff] }
  0x16   :  { %956 = vmatprep.subr.bf16.mxu1 %v990_v27 }
  0x1a   :  { %901 = vmatmul.mubr.msk.bf16.gmra.mrb[8].mxu0 %vm80_vm0, %v54_v21 }
  0x1b   :  { %904 = vmatprep.mubr.msk.bf16.mxu0 %vm80_vm0, %v55_v22 }
  0x22   :  { %905 = vmatmul.mubr.msk.bf16.gmra.mrb[12].mxu0 %vm80_vm0, %v56_v25  ;;  %v988_v25 = vld [vmem:[%s1298_s5 + $0x10] sm:$0xff]  }
  0x23   :  { %936 = vmatprep.subr.bf16.mxu0 %v988_v25 }
  0x24   :  { %937 = vmatpush3.bf16.msra.mxu0 %v988_v25 }
  0x25   :  { %938 = vmatprep.subr.bf16.mxu0 %v989_v26 }
  0x28   :  { %939 = vmatpush3.bf16.msra.mxu0 %v989_v26 }
  0xdd   :  { %v894_v33 = vpop.f32.mrb[0].mxu0 }
  0xde   :  { %v148_v34 = vadd.f32 %v894_v33, %v1223_v32  ;;  %v139_v35 = vpop.f32.mrb[1].mxu0 }
  0xdf   :  { %v140_v36 = vadd.f32 %v1223_v32, %v139_v35  ;;  %v895_v37 = vpop.f32.mrb[2].mxu0 }
  0xe0   :  { %994 = vtanh.f32 %v148_v34  ;;  %v151_v38 = vadd.f32 %v895_v37, %v1223_v32  ;;  %v142_v39 = vpop.f32.mrb[3].mxu0 }
  0xe1   :  { %996 = vtanh.f32 %v140_v36  ;;  %v143_v40 = vadd.f32 %v1223_v32, %v142_v39 }
  0xe2   :  { %998 = vtanh.f32 %v151_v38 }
  0xe3   :  { %1000 = vtanh.f32 %v143_v40 }
  0xe5   :  { %v898_v41 = vpop.f32.mrb[4].mxu0 }
  0xe6   :  { %v164_v42 = vadd.f32 %v898_v41, %v1223_v32  ;;  %v155_v43 = vpop.f32.mrb[5].mxu0 }
  0xe7   :  { %v156_v44 = vadd.f32 %v1223_v32, %v155_v43  ;;  %v899_v45 = vpop.f32.mrb[6].mxu0 }
  0xe8   :  { %1002 = vtanh.f32 %v164_v42  ;;  %v167_v46 = vadd.f32 %v899_v45, %v1223_v32  ;;  %v158_v47 = vpop.f32.mrb[7].mxu0 }
  0xe9   :  { %1004 = vtanh.f32 %v156_v44  ;;  %v159_v48 = vadd.f32 %v1223_v32, %v158_v47 }
  0xea   :  { %v995_v49 = vpop.eup %994  ;;  %1006 = vtanh.f32 %v167_v46 }
  0xeb   :  { %v997_v50 = vpop.eup %996  ;;  %1008 = vtanh.f32 %v159_v48 }
  0xec   :  { %v999_v51 = vpop.eup %998 }
  0xed   :  { %v1001_v52 = vpop.eup %1000  ;;  %v902_v53 = vpop.f32.mrb[8].mxu0  ;;  %v219_v54 = vpack.c.bf16 %v999_v51, %v995_v49 }
  0xee   :  { %v180_v55 = vadd.f32 %v902_v53, %v1223_v32  ;;  %v171_v56 = vpop.f32.mrb[9].mxu0  ;;  %v218_v57 = vpack.c.bf16 %v1001_v52, %v997_v50 }
  0xef   :  { %v172_v58 = vadd.f32 %v1223_v32, %v171_v56  ;;  %v903_v59 = vpop.f32.mrb[10].mxu0 }
  0xf0   :  { %1010 = vtanh.f32 %v180_v55  ;;  %v183_v60 = vadd.f32 %v903_v59, %v1223_v32  ;;  %916 = vmatprep.mubr.msk.bf16.mxu1 %vm265_vm1, %v218_v57  ;;  %v174_v61 = vpop.f32.mrb[11].mxu0 }
  0xf1   :  { %1012 = vtanh.f32 %v172_v58  ;;  %v175_v62 = vadd.f32 %v1223_v32, %v174_v61  ;;  %917 = vmatmul.mubr.msk.bf16.vlgmr.msra.gmra.mrb[0].mxu1 %vm265_vm1, %v219_v54 }
  0xf2   :  { %v1003_v63 = vpop.eup %1002  ;;  %1014 = vtanh.f32 %v183_v60  ;;  %957 = vmatpush3.bf16.msra.mxu1 %v990_v27 }
  0xf3   :  { %v1005_v0 = vpop.eup %1004  ;;  %1016 = vtanh.f32 %v175_v62  ;;  %958 = vmatprep.subr.bf16.mxu1 %v991_v28 }
  0xf4   :  { %v1007_v1 = vpop.eup %1006 }
  0xf5   :  { %v1009_v2 = vpop.eup %1008  ;;  %v221_v3 = vpack.c.bf16 %v1007_v1, %v1003_v63  ;;  %v906_v4 = vpop.f32.mrb[12].mxu0 }
  0xf6   :  { %v220_v5 = vpack.c.bf16 %v1009_v2, %v1005_v0  ;;  %v196_v6 = vadd.f32 %v906_v4, %v1223_v32  ;;  %v187_v7 = vpop.f32.mrb[13].mxu0  ;;  %959 = vmatpush3.bf16.msra.mxu1 %v991_v28 }
  0xf7   :  { %v188_v8 = vadd.f32 %v1223_v32, %v187_v7  ;;  %v907_v9 = vpop.f32.mrb[14].mxu0 }
  0xf8   :  { %920 = vmatprep.mubr.msk.bf16.mxu1 %vm265_vm1, %v220_v5  ;;  %1018 = vtanh.f32 %v196_v6  ;;  %v199_v10 = vadd.f32 %v907_v9, %v1223_v32  ;;  %v190_v11 = vpop.f32.mrb[15].mxu0 }
  0xf9   :  { %921 = vmatmul.mubr.msk.bf16.gmra.mrb[4].mxu1 %vm265_vm1, %v221_v3  ;;  %1020 = vtanh.f32 %v188_v8  ;;  %v191_v12 = vadd.f32 %v1223_v32, %v190_v11 }
  0xfa   :  { %v1011_v13 = vpop.eup %1010  ;;  %1022 = vtanh.f32 %v199_v10 }
  0xfb   :  { %v1013_v14 = vpop.eup %1012  ;;  %1024 = vtanh.f32 %v191_v12 }
  0xfc   :  { %v1015_v15 = vpop.eup %1014 }
  0xfd   :  { %v1017_v16 = vpop.eup %1016  ;;  %v223_v17 = vpack.c.bf16 %v1015_v15, %v1011_v13 }
  0xfe   :  { %v222_v18 = vpack.c.bf16 %v1017_v16, %v1013_v14 }
 0x100   :  { %924 = vmatprep.mubr.msk.bf16.mxu1 %vm265_vm1, %v222_v18 }
 0x101   :  { %925 = vmatmul.mubr.msk.bf16.gmra.mrb[8].mxu1 %vm265_vm1, %v223_v17 }
 0x102   :  { %v1019_v19 = vpop.eup %1018 }
 0x103   :  { %v1021_v20 = vpop.eup %1020 }
 0x104   :  { %v1023_v21 = vpop.eup %1022 }
 0x105   :  { %v1025_v22 = vpop.eup %1024  ;;  %v225_v23 = vpack.c.bf16 %v1023_v21, %v1019_v19 }
 0x106   :  { %v224_v24 = vpack.c.bf16 %v1025_v22, %v1021_v20  ;;  %v992_v22 = vld [vmem:[%s1300_s7 + $0x10] sm:$0xff]  }
 0x107   :  { %960 = vmatprep.subr.bf16.mxu1 %v992_v22 }
 0x108   :  { %928 = vmatprep.mubr.msk.bf16.mxu1 %vm265_vm1, %v224_v24  ;;  %961 = vmatpush3.bf16.msra.mxu1 %v992_v22  ;;  %v816_v24 = vld [vmem:[%s1302_s6] ss:$0 sm:$0xff] }
 0x109   :  { %929 = vmatmul.mubr.msk.bf16.gmra.mrb[12].mxu1 %vm265_vm1, %v225_v23  ;;  %v993_v23 = vld [vmem:[%s1300_s7 + $0x18] sm:$0xff]  }
 0x10a   :  { %962 = vmatprep.subr.bf16.mxu1 %v993_v23 }
 0x10c   :  { %963 = vmatpush3.bf16.msra.mxu1 %v993_v23 }
 0x1c4   :  { %v918_v30 = vpop.f32.mrb[0].mxu1 }
 0x1c5   :  { %v333_v31 = vadd.f32 %v918_v30, %v803_v29  ;;  %v324_v32 = vpop.f32.mrb[1].mxu1 }
 0x1c6   :  { %v325_v33 = vadd.f32 %v803_v29, %v324_v32  ;;  %v919_v34 = vpop.f32.mrb[2].mxu1 }
 0x1c7   :  { %1026 = vtanh.f32 %v333_v31  ;;  %v336_v35 = vadd.f32 %v919_v34, %v803_v29  ;;  %v327_v36 = vpop.f32.mrb[3].mxu1 }
 0x1c8   :  { %1028 = vtanh.f32 %v325_v33  ;;  %v328_v37 = vadd.f32 %v803_v29, %v327_v36 }
 0x1c9   :  { %1030 = vtanh.f32 %v336_v35 }
 0x1ca   :  { %1032 = vtanh.f32 %v328_v37 }
 0x1cc   :  { %v922_v38 = vpop.f32.mrb[4].mxu1 }
 0x1cd   :  { %v349_v39 = vadd.f32 %v922_v38, %v803_v29  ;;  %v340_v40 = vpop.f32.mrb[5].mxu1 }
 0x1ce   :  { %v341_v41 = vadd.f32 %v803_v29, %v340_v40  ;;  %v923_v42 = vpop.f32.mrb[6].mxu1 }
 0x1cf   :  { %1034 = vtanh.f32 %v349_v39  ;;  %v352_v43 = vadd.f32 %v923_v42, %v803_v29  ;;  %v343_v44 = vpop.f32.mrb[7].mxu1 }
 0x1d0   :  { %1036 = vtanh.f32 %v341_v41  ;;  %v344_v45 = vadd.f32 %v803_v29, %v343_v44 }
 0x1d1   :  { %v1027_v46 = vpop.eup %1026  ;;  %1038 = vtanh.f32 %v352_v43 }
 0x1d2   :  { %v1029_v47 = vpop.eup %1028  ;;  %1040 = vtanh.f32 %v344_v45 }
 0x1d3   :  { %v1031_v48 = vpop.eup %1030 }
 0x1d4   :  { %v1033_v49 = vpop.eup %1032  ;;  %v404_v50 = vpack.c.bf16 %v1031_v48, %v1027_v46  ;;  %v926_v51 = vpop.f32.mrb[8].mxu1 }
 0x1d5   :  { %v365_v52 = vadd.f32 %v926_v51, %v803_v29  ;;  %v356_v53 = vpop.f32.mrb[9].mxu1  ;;  %v403_v54 = vpack.c.bf16 %v1033_v49, %v1029_v47 }
 0x1d6   :  { %v357_v55 = vadd.f32 %v803_v29, %v356_v53  ;;  %v927_v56 = vpop.f32.mrb[10].mxu1 }
 0x1d7   :  { %1042 = vtanh.f32 %v365_v52  ;;  %v368_v57 = vadd.f32 %v927_v56, %v803_v29  ;;  %940 = vmatprep.mubr.msk.bf16.mxu0 %vm265_vm1, %v403_v54  ;;  %v359_v58 = vpop.f32.mrb[11].mxu1 }
 0x1d8   :  { %1044 = vtanh.f32 %v357_v55  ;;  %v360_v59 = vadd.f32 %v803_v29, %v359_v58  ;;  %941 = vmatmul.mubr.msk.bf16.vlgmr.msra.gmra.mrb[16].mxu0 %vm265_vm1, %v404_v50 }
 0x1d9   :  { %v1035_v60 = vpop.eup %1034  ;;  %1046 = vtanh.f32 %v368_v57 }
 0x1da   :  { %v1037_v61 = vpop.eup %1036  ;;  %1048 = vtanh.f32 %v360_v59 }
 0x1db   :  { %v1039_v62 = vpop.eup %1038 }
 0x1dc   :  { %v1041_v63 = vpop.eup %1040  ;;  %v406_v0 = vpack.c.bf16 %v1039_v62, %v1035_v60  ;;  %v930_v1 = vpop.f32.mrb[12].mxu1 }
 0x1dd   :  { %v405_v2 = vpack.c.bf16 %v1041_v63, %v1037_v61  ;;  %v381_v3 = vadd.f32 %v930_v1, %v803_v29  ;;  %v372_v4 = vpop.f32.mrb[13].mxu1 }
 0x1de   :  { %v373_v5 = vadd.f32 %v803_v29, %v372_v4  ;;  %v931_v6 = vpop.f32.mrb[14].mxu1 }
 0x1df   :  { %944 = vmatprep.mubr.msk.bf16.mxu0 %vm265_vm1, %v405_v2  ;;  %1050 = vtanh.f32 %v381_v3  ;;  %v384_v7 = vadd.f32 %v931_v6, %v803_v29  ;;  %v375_v8 = vpop.f32.mrb[15].mxu1 }
 0x1e0   :  { %945 = vmatmul.mubr.msk.bf16.gmra.mrb[20].mxu0 %vm265_vm1, %v406_v0  ;;  %1052 = vtanh.f32 %v373_v5  ;;  %v376_v9 = vadd.f32 %v803_v29, %v375_v8 }
 0x1e1   :  { %v1043_v10 = vpop.eup %1042  ;;  %1054 = vtanh.f32 %v384_v7 }
 0x1e2   :  { %v1045_v11 = vpop.eup %1044  ;;  %1056 = vtanh.f32 %v376_v9 }
 0x1e3   :  { %v1047_v12 = vpop.eup %1046 }
 0x1e4   :  { %v1049_v13 = vpop.eup %1048  ;;  %v408_v14 = vpack.c.bf16 %v1047_v12, %v1043_v10 }
 0x1e5   :  { %v407_v15 = vpack.c.bf16 %v1049_v13, %v1045_v11 }
 0x1e7   :  { %948 = vmatprep.mubr.msk.bf16.mxu0 %vm265_vm1, %v407_v15 }
 0x1e8   :  { %949 = vmatmul.mubr.msk.bf16.gmra.mrb[24].mxu0 %vm265_vm1, %v408_v14 }
 0x1e9   :  { %v1051_v16 = vpop.eup %1050 }
 0x1ea   :  { %v1053_v17 = vpop.eup %1052 }
 0x1eb   :  { %v1055_v18 = vpop.eup %1054 }
 0x1ec   :  { %v1057_v19 = vpop.eup %1056  ;;  %v410_v20 = vpack.c.bf16 %v1055_v18, %v1051_v16 }
 0x1ed   :  { %v409_v21 = vpack.c.bf16 %v1057_v19, %v1053_v17  ;;  %v829_v17 = vld [vmem:[%s1303_s8] ss:$0 sm:$0xff] }
 0x1ef   :  { %952 = vmatprep.mubr.msk.bf16.mxu0 %vm265_vm1, %v409_v21 }
 0x1f0   :  { %953 = vmatmul.mubr.msk.bf16.gmra.mrb[28].mxu0 %vm265_vm1, %v410_v20 }
 0x2ab   :  { %v942_v25 = vpop.f32.mrb[16].mxu0 }
 0x2ac   :  { %v517_v26 = vadd.f32 %v942_v25, %v816_v24  ;;  %v508_v27 = vpop.f32.mrb[17].mxu0 }
 0x2ad   :  { %v509_v28 = vadd.f32 %v816_v24, %v508_v27  ;;  %v943_v29 = vpop.f32.mrb[18].mxu0 }
 0x2ae   :  { %1058 = vtanh.f32 %v517_v26  ;;  %v520_v30 = vadd.f32 %v943_v29, %v816_v24  ;;  %v511_v31 = vpop.f32.mrb[19].mxu0 }
 0x2af   :  { %1060 = vtanh.f32 %v509_v28  ;;  %v512_v32 = vadd.f32 %v816_v24, %v511_v31 }
 0x2b0   :  { %1062 = vtanh.f32 %v520_v30 }
 0x2b1   :  { %1064 = vtanh.f32 %v512_v32 }
 0x2b3   :  { %v946_v33 = vpop.f32.mrb[20].mxu0 }
 0x2b4   :  { %v533_v34 = vadd.f32 %v946_v33, %v816_v24  ;;  %v524_v35 = vpop.f32.mrb[21].mxu0 }
 0x2b5   :  { %v525_v36 = vadd.f32 %v816_v24, %v524_v35  ;;  %v947_v37 = vpop.f32.mrb[22].mxu0 }
 0x2b6   :  { %1066 = vtanh.f32 %v533_v34  ;;  %v536_v38 = vadd.f32 %v947_v37, %v816_v24  ;;  %v527_v39 = vpop.f32.mrb[23].mxu0 }
 0x2b7   :  { %1068 = vtanh.f32 %v525_v36  ;;  %v528_v40 = vadd.f32 %v816_v24, %v527_v39 }
 0x2b8   :  { %v1059_v41 = vpop.eup %1058  ;;  %1070 = vtanh.f32 %v536_v38 }
 0x2b9   :  { %v1061_v42 = vpop.eup %1060  ;;  %1072 = vtanh.f32 %v528_v40 }
 0x2ba   :  { %v1063_v43 = vpop.eup %1062 }
 0x2bb   :  { %v1065_v44 = vpop.eup %1064  ;;  %v588_v45 = vpack.c.bf16 %v1063_v43, %v1059_v41  ;;  %v950_v46 = vpop.f32.mrb[24].mxu0 }
 0x2bc   :  { %v549_v47 = vadd.f32 %v950_v46, %v816_v24  ;;  %v540_v48 = vpop.f32.mrb[25].mxu0  ;;  %v587_v49 = vpack.c.bf16 %v1065_v44, %v1061_v42 }
 0x2bd   :  { %v541_v50 = vadd.f32 %v816_v24, %v540_v48  ;;  %v951_v51 = vpop.f32.mrb[26].mxu0 }
 0x2be   :  { %1074 = vtanh.f32 %v549_v47  ;;  %v552_v52 = vadd.f32 %v951_v51, %v816_v24  ;;  %964 = vmatprep.mubr.msk.bf16.mxu1 %vm265_vm1, %v587_v49  ;;  %v543_v53 = vpop.f32.mrb[27].mxu0 }
 0x2bf   :  { %1076 = vtanh.f32 %v541_v50  ;;  %v544_v54 = vadd.f32 %v816_v24, %v543_v53  ;;  %965 = vmatmul.mubr.msk.bf16.vlgmr.msra.gmra.mrb[16].mxu1 %vm265_vm1, %v588_v45 }
 0x2c0   :  { %v1067_v55 = vpop.eup %1066  ;;  %1078 = vtanh.f32 %v552_v52 }
 0x2c1   :  { %v1069_v56 = vpop.eup %1068  ;;  %1080 = vtanh.f32 %v544_v54 }
 0x2c2   :  { %v1071_v57 = vpop.eup %1070 }
 0x2c3   :  { %v1073_v58 = vpop.eup %1072  ;;  %v590_v59 = vpack.c.bf16 %v1071_v57, %v1067_v55  ;;  %v954_v60 = vpop.f32.mrb[28].mxu0 }
 0x2c4   :  { %v589_v61 = vpack.c.bf16 %v1073_v58, %v1069_v56  ;;  %v565_v62 = vadd.f32 %v954_v60, %v816_v24  ;;  %v556_v63 = vpop.f32.mrb[29].mxu0 }
 0x2c5   :  { %v557_v0 = vadd.f32 %v816_v24, %v556_v63  ;;  %v955_v1 = vpop.f32.mrb[30].mxu0 }
 0x2c6   :  { %968 = vmatprep.mubr.msk.bf16.mxu1 %vm265_vm1, %v589_v61  ;;  %1082 = vtanh.f32 %v565_v62  ;;  %v568_v2 = vadd.f32 %v955_v1, %v816_v24  ;;  %v559_v3 = vpop.f32.mrb[31].mxu0 }
 0x2c7   :  { %969 = vmatmul.mubr.msk.bf16.gmra.mrb[20].mxu1 %vm265_vm1, %v590_v59  ;;  %1084 = vtanh.f32 %v557_v0  ;;  %v560_v4 = vadd.f32 %v816_v24, %v559_v3 }
 0x2c8   :  { %v1075_v5 = vpop.eup %1074  ;;  %1086 = vtanh.f32 %v568_v2 }
 0x2c9   :  { %v1077_v6 = vpop.eup %1076  ;;  %1088 = vtanh.f32 %v560_v4 }
 0x2ca   :  { %v1079_v7 = vpop.eup %1078 }
 0x2cb   :  { %v1081_v8 = vpop.eup %1080  ;;  %v592_v9 = vpack.c.bf16 %v1079_v7, %v1075_v5 }
 0x2cc   :  { %v591_v10 = vpack.c.bf16 %v1081_v8, %v1077_v6 }
 0x2ce   :  { %972 = vmatprep.mubr.msk.bf16.mxu1 %vm265_vm1, %v591_v10 }
 0x2cf   :  { %973 = vmatmul.mubr.msk.bf16.gmra.mrb[24].mxu1 %vm265_vm1, %v592_v9 }
 0x2d0   :  { %v1083_v11 = vpop.eup %1082 }
 0x2d1   :  { %v1085_v12 = vpop.eup %1084 }
 0x2d2   :  { %v1087_v13 = vpop.eup %1086 }
 0x2d3   :  { %v1089_v14 = vpop.eup %1088  ;;  %v594_v15 = vpack.c.bf16 %v1087_v13, %v1083_v11 }
 0x2d4   :  { %v593_v16 = vpack.c.bf16 %v1089_v14, %v1085_v12 }
 0x2d6   :  { %976 = vmatprep.mubr.msk.bf16.mxu1 %vm265_vm1, %v593_v16 }
 0x2d7   :  { %977 = vmatmul.mubr.msk.bf16.gmra.mrb[28].mxu1 %vm265_vm1, %v594_v15 }
 0x392   :  { %v966_v18 = vpop.f32.mrb[16].mxu1 }
 0x393   :  { %v692_v19 = vpop.f32.mrb[17].mxu1  ;;  %v701_v26 = vadd.f32 %v966_v18, %v829_v17 }
 0x394   :  { %v967_v20 = vpop.f32.mrb[18].mxu1  ;;  %v693_v21 = vadd.f32 %v829_v17, %v692_v19 }
 0x395   :  { %v695_v22 = vpop.f32.mrb[19].mxu1  ;;  %v704_v29 = vadd.f32 %v967_v20, %v829_v17 }
 0x396   :  { %755 = vxpose.xlu0.b32.start [1/16] (narrow) %v693_v21, 8  ;;  %v696_v23 = vadd.f32 %v829_v17, %v695_v22 }
 0x39a   :  { %v970_v24 = vpop.f32.mrb[20].mxu1  ;;  %756 = vxpose.xlu0.b32.cont [2/16] (narrow) %v696_v23, 8 }
 0x39b   :  { %v708_v25 = vpop.f32.mrb[21].mxu1  ;;  %v717_v38 = vadd.f32 %v970_v24, %v829_v17 }
 0x39c   :  { %v971_v27 = vpop.f32.mrb[22].mxu1  ;;  %v709_v32 = vadd.f32 %v829_v17, %v708_v25 }
 0x39d   :  { %v711_v28 = vpop.f32.mrb[23].mxu1  ;;  %v720_v41 = vadd.f32 %v971_v27, %v829_v17 }
 0x39e   :  { %757 = vxpose.xlu0.b32.cont [3/16] (narrow) %v701_v26, 8  ;;  %v712_v35 = vadd.f32 %v829_v17, %v711_v28 }
 0x3a2   :  { %758 = vxpose.xlu0.b32.cont [4/16] (narrow) %v704_v29, 8  ;;  %v974_v30 = vpop.f32.mrb[24].mxu1 }
 0x3a3   :  { %v724_v31 = vpop.f32.mrb[25].mxu1  ;;  %v733_v44 = vadd.f32 %v974_v30, %v829_v17 }
 0x3a4   :  { %v975_v33 = vpop.f32.mrb[26].mxu1  ;;  %v725_v42 = vadd.f32 %v829_v17, %v724_v31 }
 0x3a5   :  { %v727_v34 = vpop.f32.mrb[27].mxu1  ;;  %v736_v45 = vadd.f32 %v975_v33, %v829_v17 }
 0x3a6   :  { %759 = vxpose.xlu0.b32.cont [5/16] (narrow) %v709_v32, 8  ;;  %v728_v43 = vadd.f32 %v829_v17, %v727_v34 }
 0x3aa   :  { %760 = vxpose.xlu0.b32.cont [6/16] (narrow) %v712_v35, 8  ;;  %v978_v36 = vpop.f32.mrb[28].mxu1 }
 0x3ab   :  { %v740_v37 = vpop.f32.mrb[29].mxu1  ;;  %v749_v48 = vadd.f32 %v978_v36, %v829_v17 }
 0x3ac   :  { %v979_v39 = vpop.f32.mrb[30].mxu1  ;;  %v741_v46 = vadd.f32 %v829_v17, %v740_v37 }
 0x3ad   :  { %v743_v40 = vpop.f32.mrb[31].mxu1  ;;  %v752_v49 = vadd.f32 %v979_v39, %v829_v17 }
 0x3ae   :  { %761 = vxpose.xlu0.b32.cont [7/16] (narrow) %v717_v38, 8  ;;  %v744_v47 = vadd.f32 %v829_v17, %v743_v40 }
 0x3b2   :  { %762 = vxpose.xlu0.b32.cont [8/16] (narrow) %v720_v41, 8 }
 0x3b6   :  { %763 = vxpose.xlu0.b32.cont [9/16] (narrow) %v725_v42, 8 }
 0x3ba   :  { %764 = vxpose.xlu0.b32.cont [10/16] (narrow) %v728_v43, 8 }
 0x3be   :  { %765 = vxpose.xlu0.b32.cont [11/16] (narrow) %v733_v44, 8 }
 0x3c2   :  { %766 = vxpose.xlu0.b32.cont [12/16] (narrow) %v736_v45, 8 }
 0x3c6   :  { %767 = vxpose.xlu0.b32.cont [13/16] (narrow) %v741_v46, 8 }
 0x3ca   :  { %768 = vxpose.xlu0.b32.cont [14/16] (narrow) %v744_v47, 8 }
 0x3ce   :  { %769 = vxpose.xlu0.b32.cont [15/16] (narrow) %v749_v48, 8 }
 0x3d2   :  { %770 = vxpose.xlu0.b32.end [16/16] (narrow) %v752_v49, 8 }
 0x416   :  { %v771_v50 = vpop.trf.xlu0 }
 0x417   :  { %787 = vst [vmem:[%s1304_s9] sm:$0x1] %v771_v50 }

</bundles_post_ra>
